<compile_context>
chip_gen: v7x
topology: tpu7x:2x2x1
jax: 0.10.0
libtpu: 0.0.40
codegen_flags: <defaults>
</compile_context>

<pallas_src>
import functools

import jax
import jax.numpy as jnp
from jax.experimental import pallas as pl
from jax.experimental.pallas import tpu as pltpu

_LANE = 128
_TARGET_BLOCK_BYTES = 2 * 1024 * 1024  # ~2 MiB input block; ~8 MiB with 2x-buffered in+out


def _pow_static(v, exponent):
    """Static-exponent power with torch.pow semantics.

    Integral exponents -> repeated multiplication (correct signed result for
    negative bases, matches torch).  Non-integral -> jnp.power (negative base
    gives nan, matches torch).  exponent == 0 -> ones (torch: 0**0 == 1).
    """
    e = float(exponent)
    if e == 1.0:
        return v
    if e.is_integer() and abs(e) <= 16:
        n = int(abs(e))
        if n == 0:
            return jnp.ones_like(v)
        result, base = None, v
        while n:  # exponentiation by squaring, fully unrolled at trace time
            if n & 1:
                result = base if result is None else result * base
            n >>= 1
            if n:
                base = base * base
        if e < 0:
            result = 1.0 / result
        return result
    return jnp.power(v, e)


def _cswish_math(x, inv_slope, exponent):
    xf = x.astype(jnp.float32)
    # sigmoid(z) == 0.5 * (1 + tanh(z / 2)) — single EUP op, exact.
    sig = 0.5 * (1.0 + jnp.tanh(xf * (0.5 * inv_slope)))
    return _pow_static(xf * sig, exponent)


def _cswish_kernel(x_ref, o_ref, *, inv_slope, exponent):
    o_ref[...] = _cswish_math(x_ref[...], inv_slope, exponent).astype(o_ref.dtype)


def cswish(x, slope=1.0, exponent=1.0, *, target_block_bytes=_TARGET_BLOCK_BYTES):
    """(x * sigmoid(x / slope)) ** exponent, elementwise.

    x: arbitrary-shape float array (NCHW in the demo).
    slope, exponent: Python scalars (the module's static constructor constants).
    """
    orig_shape = x.shape
    dtype = x.dtype
    inv_slope = 1.0 / float(slope)
    exponent = float(exponent)

    flat = x.reshape(-1)
    n = flat.shape[0]
    rows = n // _LANE
    bulk_n = rows * _LANE

    parts = []
    if rows > 0:
        slab = flat[:bulk_n].reshape(rows, _LANE)  # lane-dense 2D slab, no padding

        # dtype-aware block rows: ~target_block_bytes per block, multiple of the
        # sublane packing (8 for f32, 16 for bf16, 32 for int8/fp8), or full extent.
        itemsize = jnp.dtype(dtype).itemsize
        sublane = max(8, 32 // itemsize)
        br = max(sublane, (target_block_bytes // (_LANE * itemsize)) // sublane * sublane)
        br = min(br, rows)  # full extent if the slab is small

        kernel = functools.partial(_cswish_kernel, inv_slope=inv_slope, exponent=exponent)
        out_slab = pl.pallas_call(
            kernel,
            out_shape=jax.ShapeDtypeStruct((rows, _LANE), dtype),
            grid=(pl.cdiv(rows, br),),
            in_specs=[pl.BlockSpec((br, _LANE), lambda i: (i, 0))],
            out_specs=pl.BlockSpec((br, _LANE), lambda i: (i, 0)),
            compiler_params=pltpu.CompilerParams(
                dimension_semantics=("parallel",),
                vmem_limit_bytes=32 * 1024 * 1024,
            ),
        )(slab)
        parts.append(out_slab.reshape(-1))

    if bulk_n != n:
        # <128-element ragged tail: plain jnp, avoids an extra pad+slice HBM pass.
        parts.append(_cswish_math(flat[bulk_n:], inv_slope, exponent).astype(dtype))

    out_flat = parts[0] if len(parts) == 1 else jnp.concatenate(parts)
    return out_flat.reshape(orig_shape)


if __name__ == "__main__":
    key = jax.random.PRNGKey(0)

    def ref_cswish(x, slope, power):
        return jnp.power(x * jax.nn.sigmoid(x / slope), power)

    # NCHW input, small shape, module defaults CSwish(slope=1, power=1).
    x = jax.random.normal(key, (2, 4, 16, 16), dtype=jnp.float32)
    out = jax.block_until_ready(cswish(x, slope=1.0, exponent=1.0))
    assert out.shape == x.shape and out.dtype == x.dtype
    assert jnp.allclose(out, ref_cswish(x, 1.0, 1.0), atol=1e-5, rtol=1e-5)

    # Non-default slope + exponent==2.
    out2 = jax.block_until_ready(cswish(x, slope=2.0, exponent=2.0))
    assert jnp.allclose(out2, ref_cswish(x, 2.0, 2.0), atol=1e-5, rtol=1e-5)

    # Integral exponent 3: negative bases must keep their sign (torch.pow semantics).
    out3 = jax.block_until_ready(cswish(x, slope=1.0, exponent=3.0))
    sw = x * jax.nn.sigmoid(x)
    assert jnp.allclose(out3, sw * sw * sw, atol=1e-5, rtol=1e-5)
    assert bool(jnp.all(jnp.isfinite(out3)))

    # Non-128-aligned total size: exercises the bulk kernel + jnp tail path.
    x4 = jax.random.normal(jax.random.PRNGKey(1), (2, 3, 17, 17), dtype=jnp.float32)
    out4 = jax.block_until_ready(cswish(x4, slope=1.0, exponent=1.0))
    assert out4.shape == x4.shape
    assert jnp.allclose(out4, ref_cswish(x4, 1.0, 1.0), atol=1e-5, rtol=1e-5)

    print("KERNEL_OK")
</pallas_src>

<mosaic_0001>
module attributes {stable_mosaic.version = 11 : i64} {
  func.func @_cswish_kernel(%arg0: i32, %arg1: memref<16x128xf32, #tpu.memory_space<vmem>>, %arg2: memref<16x128xf32, #tpu.memory_space<vmem>>) attributes {dimension_semantics = [#tpu.dimension_semantics<parallel>], iteration_bounds = array<i64: 1>, scalar_prefetch = 0 : i64, scratch_operands = 0 : i64, tpu.core_type = #tpu.core_type<tc>, window_params = [{transform_indices = @transform_0, window_bounds = array<i64: 16, 128>}, {transform_indices = @transform_1, window_bounds = array<i64: 16, 128>}]} {
    %c0 = arith.constant 0 : index
    %c0_0 = arith.constant 0 : index
    %0 = vector.load %arg1[%c0, %c0_0] : memref<16x128xf32, #tpu.memory_space<vmem>>, vector<16x128xf32>
    %cst = arith.constant 5.000000e-01 : f32
    %1 = vector.broadcast %cst : f32 to vector<16x128xf32>
    %2 = arith.mulf %0, %1 : vector<16x128xf32>
    %3 = math.tanh %2 : vector<16x128xf32>
    %cst_1 = arith.constant 1.000000e+00 : f32
    %4 = vector.broadcast %cst_1 : f32 to vector<16x128xf32>
    %5 = arith.addf %4, %3 : vector<16x128xf32>
    %cst_2 = arith.constant 5.000000e-01 : f32
    %6 = vector.broadcast %cst_2 : f32 to vector<16x128xf32>
    %7 = arith.mulf %6, %5 : vector<16x128xf32>
    %8 = arith.mulf %0, %7 : vector<16x128xf32>
    %c0_3 = arith.constant 0 : index
    %c0_4 = arith.constant 0 : index
    %9 = vector.load %arg2[%c0_3, %c0_4] : memref<16x128xf32, #tpu.memory_space<vmem>>, vector<16x128xf32>
    tpu.vector_store %arg2[%c0_3, %c0_4], %8 {strides = array<i32>} : memref<16x128xf32, #tpu.memory_space<vmem>>, vector<16x128xf32>,
    return
  }
  func.func @transform_0(%arg0: i32) -> (i32, i32) {
    %c0_i32 = arith.constant 0 : i32
    %c0_i32_0 = arith.constant 0 : i32
    return %arg0, %c0_i32 : i32, i32
  }
  func.func @transform_1(%arg0: i32) -> (i32, i32) {
    %c0_i32 = arith.constant 0 : i32
    %c0_i32_0 = arith.constant 0 : i32
    return %arg0, %c0_i32 : i32, i32
  }
}

</mosaic_0001>

<bundles_post_ra>
// kernel: tpu_custom_call.1
= control target key start
LH: loop header
LB: loop body
LE: loop exit
PB: predicated region body
PF: predicated region fallthrough
CT: control target
= control target key end

     0   :  { %6 = vsyncpa [#allocation3], 0  ;;  %s154_s0 = inlined_call_operand.hbm [shape: f32[16,128], index: 0, kind: input, shape index: {}]   ;;  %s155_s1 = inlined_call_operand.hbm [shape: f32[16,128], index: 1, kind: output, shape index: {}]  }
   0x1   :  { %7 = vsyncpa [#allocation4], 0  ;;  %s110_s6 = smov [#allocation2]   ;;  %s62_s10 = scalar_lea.hbm %s154_s0, 256 }
   0x2   :  { %s13_s7 = sshll.u32 %s110_s6, 4  ;;  %p63_p0 = scmp.ne.s32.totalorder %s154_s0, %s62_s10  ;;  %s14_s7 = int_to_ptr.vmem [resolvable:$true] %s13_s7 }
   0x3   :  { %p66_p1 = scmp.lt.u32.totalorder %s62_s10, %s154_s0 }
   0x5   :  { %p68_p2 = pnand %p66_p1, %p63_p0 }
   0x7   :  { %71 = shalt.err (!%p68_p2)
}
   0x8   :  { %s72_s15 = scalar_lea.vmem %s14_s7, 256  ;;  %p77_p4 = scmp.lt.s32.totalorder %s14_s7, %s14_s7 }
   0x9   :  { %p73_p3 = scmp.ne.s32.totalorder %s14_s7, %s72_s15  ;;  %p78_p5 = scmp.lt.s32.totalorder %s72_s15, %s72_s15 }
   0xb   :  { %p79_p6 = por %p78_p5, %p77_p4 }
   0xd   :  { %p80_p7 = pnand %p79_p6, %p73_p3 }
   0xf   :  { %83 = shalt.err (!%p80_p7)
}
  0x10   :  { %s111_s16 = smov 128   ;;  %s112_s17 = smov 8  }
  0x11   :  { %19 = dma.hbm_to_vmem [thread:$0]  %s154_s0, 256, %s14_s7, [#allocation3], %s111_s16, %s111_s16, %s112_s17  }
  0x12   :  { %106 = dma.done.wait [#allocation3], 256  }
  0x13   :  { %107 = vsyncadd [#allocation3], 4294967040  ;;  %v23_v0 = vld [vmem:[#allocation2] sm:$0xff]  ;;  %v24_v1 = vld [vmem:[#allocation2 + $0x8] sm:$0xff]  ;;  %s113_s20 = smov [#allocation5]  }
  0x14   :  { %v25_v2 = vmul.f32 0.5, %v23_v0  ;;  %v26_v3 = vmul.f32 0.5, %v24_v1  ;;  %s42_s21 = sshll.u32 %s113_s20, 4  ;;  %s43_s21 = int_to_ptr.vmem [resolvable:$true] %s42_s21 }
  0x15   :  { %s84_s0 = scalar_lea.vmem %s43_s21, 256  ;;  %p89_p9 = scmp.lt.s32.totalorder %s43_s21, %s43_s21 }
  0x16   :  { %58 = vtanh.f32 %v25_v2  ;;  %p85_p8 = scmp.ne.s32.totalorder %s43_s21, %s84_s0  ;;  %p90_p10 = scmp.lt.s32.totalorder %s84_s0, %s84_s0 }
  0x17   :  { %60 = vtanh.f32 %v26_v3 }
  0x18   :  { %p91_p11 = por %p90_p10, %p89_p9 }
  0x1a   :  { %p92_p12 = pnand %p91_p11, %p85_p8 }
  0x20   :  { %v59_v4 = vpop.eup %58 }
  0x21   :  { %v61_v5 = vpop.eup %60  ;;  %v29_v6 = vadd.f32 1.0, %v59_v4 }
  0x22   :  { %v30_v7 = vadd.f32 1.0, %v61_v5 }
  0x23   :  { %v31_v8 = vmul.f32 0.5, %v29_v6 }
  0x24   :  { %v32_v9 = vmul.f32 0.5, %v30_v7 }
  0x25   :  { %v33_v10 = vmul.f32 %v31_v8, %v23_v0 }
  0x26   :  { %v34_v11 = vmul.f32 %v32_v9, %v24_v1 }
  0x27   :  { %35 = vst [vmem:[#allocation5] sm:$0xff] %v33_v10 }
  0x28   :  { %36 = vst [vmem:[#allocation5 + $0x8] sm:$0xff] %v34_v11 }
  0x29   :  { %95 = shalt.err (!%p92_p12)
}
  0x2a   :  { %s96_s24 = scalar_lea.hbm %s155_s1, 256 }
  0x2b   :  { %p97_p13 = scmp.ne.s32.totalorder %s155_s1, %s96_s24  ;;  %p100_p0 = scmp.lt.u32.totalorder %s96_s24, %s155_s1 }
  0x2d   :  { %p102_p1 = pnand %p100_p0, %p97_p13 }
  0x2f   :  { %105 = shalt.err (!%p102_p1)
}
  0x30   :  { %48 = dma.vmem_to_hbm [thread:$0]  %s43_s21, 256, %s155_s1, [#allocation4], %s111_s16, %s111_s16, %s112_s17  }
  0x31   :  { %108 = dma.done.wait [#allocation4], 256  }
  0x32   :  { %109 = vsyncadd [#allocation4], 4294967040 }
  0x33   :  { %52 = vsyncpa [#allocation3], 1 }
  0x34   :  { %53 = vsyncpa [#allocation4], 1 }

</bundles_post_ra>
